<compile_context>
chip_gen: v7x
topology: tpu7x:2x2x1
jax: 0.10.0
libtpu: 0.0.40
codegen_flags: <defaults>
</compile_context>

<pallas_src>
import functools

import jax
import jax.numpy as jnp
from jax.experimental import pallas as pl
from jax.experimental.pallas import tpu as pltpu


def _se_kernel(x_ref, w1t_ref, bias_ref, w2t_ref, o_ref, *, inv_hw):
    # x block: (nb, C, HW)   w1t: (C, E)   bias: (1, E)   w2t: (E, C)
    x = x_ref[...]
    # AdaptiveAvgPool2d(1): accumulate in f32 without materializing an f32
    # copy of the whole tile (avoids 2x VMEM + an extra VMEM pass for bf16).
    pooled = jnp.sum(x, axis=-1, dtype=jnp.float32) * inv_hw            # (nb, C)
    # 1x1 conv (C -> E) with BN folded into the weight; add bias; ReLU.
    h = jnp.dot(pooled, w1t_ref[...], preferred_element_type=jnp.float32)
    h = jnp.maximum(h + bias_ref[...], 0.0)                             # (nb, E)
    # 1x1 conv (E -> C), no bias.
    s = jnp.dot(h, w2t_ref[...], preferred_element_type=jnp.float32)    # (nb, C)
    # Hardsigmoid: relu6(s + 3) / 6.
    gate = jnp.clip((s + 3.0) * (1.0 / 6.0), 0.0, 1.0)                  # (nb, C)
    # Scale the input feature map; keep the multiply in the activation dtype.
    gate = gate.astype(o_ref.dtype)
    o_ref[...] = x * gate[:, :, None]


def _chip_config():
    """(block_bytes, vmem_limit_bytes, num_tensorcores) per TPU generation."""
    kind = ""
    try:
        kind = jax.devices()[0].device_kind.lower()
    except Exception:  # pragma: no cover - e.g. no devices in some envs
        pass
    if "v7" in kind:
        # 64 MiB physical VMEM per TC, 2 TensorCores per chip.
        return 6 << 20, 48 << 20, 2
    if "v6" in kind:
        # 128 MiB physical VMEM, single TC: big blocks, long DMAs.
        return 12 << 20, 96 << 20, 1
    if "v5" in kind:
        # v5e: 16 MiB default scoped VMEM but 128 MiB physical -> raise limit.
        return 8 << 20, 64 << 20, 1
    # Unknown chip: conservative defaults.
    return 4 << 20, None, 1


def se_module(x, w1, bn_scale, bn_bias, w2, *, block_bytes=None):
    """x: (N, C, H, W). w1: (E, C), w2: (C, E), bn_scale/bn_bias: (E,)."""
    N, C, H, W = x.shape
    E = w1.shape[0]
    HW = H * W

    chip_block_bytes, vmem_limit, num_tc = _chip_config()
    if block_bytes is None:
        block_bytes = chip_block_bytes

    # Fold BN (inference) into the first conv weight; pre-transpose weights so
    # the kernel runs plain row-major (nb, K) @ (K, M) matmuls.
    w1t = (bn_scale[:, None] * w1).T.astype(jnp.float32)     # (C, E)
    w2t = w2.T.astype(jnp.float32)                           # (E, C)
    bias = bn_bias.reshape(1, E).astype(jnp.float32)

    # Images per grid step: fill ~block_bytes per input block (auto-pipeline
    # double-buffers in + out => ~4x in VMEM).  No batch padding: the last
    # block may be ragged (OOB reads are garbage rows, their writes are
    # masked; every row is computed independently so this is safe).  Only on
    # multi-TensorCore chips do we force the grid length to a multiple of the
    # TC count so megacore sharding is balanced; on single-TC chips the grid
    # is a sequential loop and bigger blocks always win.
    per_img = C * HW * x.dtype.itemsize
    nb = max(1, min(N, block_bytes // max(per_img, 1)))
    n_blocks = -(-N // nb)
    if num_tc >= 2 and N >= 2 and n_blocks % num_tc != 0:
        n_blocks = -(-n_blocks // num_tc) * num_tc
        nb = -(-N // n_blocks)
        n_blocks = -(-N // nb)

    x_r = x.reshape(N, C, HW)                                # no pad, no copy pass

    itemsize = x.dtype.itemsize
    cost = pl.CostEstimate(
        flops=4 * N * C * E + 5 * N * C * HW,
        transcendentals=0,
        bytes_accessed=2 * N * C * HW * itemsize + (2 * C * E + E) * 4,
    )

    compiler_kwargs = dict(dimension_semantics=("parallel",))
    if vmem_limit is not None:
        compiler_kwargs["vmem_limit_bytes"] = vmem_limit

    kernel = functools.partial(_se_kernel, inv_hw=1.0 / HW)
    out = pl.pallas_call(
        kernel,
        out_shape=jax.ShapeDtypeStruct((N, C, HW), x.dtype),
        grid_spec=pltpu.PrefetchScalarGridSpec(
            num_scalar_prefetch=0,
            grid=(n_blocks,),
            in_specs=[
                pl.BlockSpec((nb, C, HW), lambda n: (n, 0, 0)),
                pl.BlockSpec((C, E), lambda n: (0, 0)),
                pl.BlockSpec((1, E), lambda n: (0, 0)),
                pl.BlockSpec((E, C), lambda n: (0, 0)),
            ],
            out_specs=pl.BlockSpec((nb, C, HW), lambda n: (n, 0, 0)),
        ),
        compiler_params=pltpu.CompilerParams(**compiler_kwargs),
        cost_estimate=cost,
    )(x_r, w1t, bias, w2t)

    return out.reshape(N, C, H, W)


def se_reference(x, w1, bn_scale, bn_bias, w2):
    pooled = jnp.mean(x, axis=(2, 3))                        # (N, C)
    h = pooled @ w1.T                                        # (N, E)
    h = jnp.maximum(h * bn_scale[None, :] + bn_bias[None, :], 0.0)
    s = h @ w2.T                                             # (N, C)
    gate = jnp.clip((s + 3.0) / 6.0, 0.0, 1.0)
    return x * gate[:, :, None, None]


def _make_params(key, C, reduction=4):
    E = max(C // reduction, 8)                               # expand_size
    k_w1, k_w2, k_g, k_b, k_m, k_v = jax.random.split(key, 6)
    w1 = jax.random.normal(k_w1, (E, C), dtype=jnp.float32) * 0.1   # Conv2d(C->E, 1x1)
    w2 = jax.random.normal(k_w2, (C, E), dtype=jnp.float32) * 0.1   # Conv2d(E->C, 1x1)
    gamma = 1.0 + 0.1 * jax.random.normal(k_g, (E,), dtype=jnp.float32)
    beta = 0.1 * jax.random.normal(k_b, (E,), dtype=jnp.float32)
    running_mean = 0.1 * jax.random.normal(k_m, (E,), dtype=jnp.float32)
    running_var = jnp.abs(1.0 + 0.1 * jax.random.normal(k_v, (E,), dtype=jnp.float32))
    eps = 1e-5
    bn_scale = gamma / jnp.sqrt(running_var + eps)           # fold BN (inference)
    bn_bias = beta - running_mean * bn_scale
    return w1, bn_scale, bn_bias, w2


if __name__ == "__main__":
    key = jax.random.PRNGKey(0)
    k_p1, k_x1, k_p2, k_x2 = jax.random.split(key, 4)

    # Case 1: 128-aligned spatial size (lane-dense stores).
    N, C, H, W = 2, 16, 16, 16
    w1, bn_scale, bn_bias, w2 = _make_params(k_p1, C)
    x = jax.random.normal(k_x1, (N, C, H, W), dtype=jnp.float32)
    out = jax.block_until_ready(se_module(x, w1, bn_scale, bn_bias, w2))
    ref = se_reference(x, w1, bn_scale, bn_bias, w2)
    assert out.shape == (N, C, H, W)
    assert jnp.allclose(out, ref, atol=1e-5, rtol=1e-5), "mismatch vs reference (case 1)"

    # Case 2: MobileNetV3-style odd spatial size (HW=49, masked-lane reduce/store,
    # no padding / slicing passes).
    N2, C2, H2, W2 = 3, 16, 7, 7
    w1b, bn_scale_b, bn_bias_b, w2b = _make_params(k_p2, C2)
    x2 = jax.random.normal(k_x2, (N2, C2, H2, W2), dtype=jnp.float32)
    out2 = jax.block_until_ready(se_module(x2, w1b, bn_scale_b, bn_bias_b, w2b))
    ref2 = se_reference(x2, w1b, bn_scale_b, bn_bias_b, w2b)
    assert out2.shape == (N2, C2, H2, W2)
    assert jnp.allclose(out2, ref2, atol=1e-5, rtol=1e-5), "mismatch vs reference (case 2)"

    # Case 3: force a ragged last batch block (N=3, nb=2) to exercise the
    # no-batch-padding path with masked out-of-bounds writes.
    out3 = jax.block_until_ready(
        se_module(x2, w1b, bn_scale_b, bn_bias_b, w2b,
                  block_bytes=2 * C2 * H2 * W2 * x2.dtype.itemsize))
    assert jnp.allclose(out3, ref2, atol=1e-5, rtol=1e-5), "mismatch vs reference (case 3)"

    print("KERNEL_OK")
</pallas_src>

<mosaic_0001>
module attributes {stable_mosaic.version = 11 : i64} {
  func.func @_se_kernel(%arg0: i32, %arg1: memref<2x16x256xf32, #tpu.memory_space<vmem>>, %arg2: memref<16x8xf32, #tpu.memory_space<vmem>>, %arg3: memref<1x8xf32, #tpu.memory_space<vmem>>, %arg4: memref<8x16xf32, #tpu.memory_space<vmem>>, %arg5: memref<2x16x256xf32, #tpu.memory_space<vmem>>) attributes {dimension_semantics = [#tpu.dimension_semantics<parallel>], iteration_bounds = array<i64: 1>, scalar_prefetch = 0 : i64, scratch_operands = 0 : i64, tpu.core_type = #tpu.core_type<tc>, window_params = [{transform_indices = @transform_0, window_bounds = array<i64: 2, 16, 256>}, {pipeline_mode = #tpu.pipeline_mode<synchronous>, transform_indices = @transform_1, window_bounds = array<i64: 16, 8>}, {pipeline_mode = #tpu.pipeline_mode<synchronous>, transform_indices = @transform_2, window_bounds = array<i64: 1, 8>}, {pipeline_mode = #tpu.pipeline_mode<synchronous>, transform_indices = @transform_3, window_bounds = array<i64: 8, 16>}, {transform_indices = @transform_4, window_bounds = array<i64: 2, 16, 256>}]} {
    %c0 = arith.constant 0 : index
    %c0_0 = arith.constant 0 : index
    %c0_1 = arith.constant 0 : index
    %0 = vector.load %arg1[%c0, %c0_0, %c0_1] : memref<2x16x256xf32, #tpu.memory_space<vmem>>, vector<2x16x256xf32>
    %cst = arith.constant dense<0.000000e+00> : vector<2x16xf32>
    %1 = vector.multi_reduction <add>, %0, %cst [2] : vector<2x16x256xf32> to vector<2x16xf32>
    %cst_2 = arith.constant 3.906250e-03 : f32
    %2 = vector.broadcast %cst_2 : f32 to vector<2x16xf32>
    %3 = arith.mulf %1, %2 : vector<2x16xf32>
    %c0_3 = arith.constant 0 : index
    %c0_4 = arith.constant 0 : index
    %4 = vector.load %arg2[%c0_3, %c0_4] : memref<16x8xf32, #tpu.memory_space<vmem>>, vector<16x8xf32>
    %cst_5 = arith.constant dense<0.000000e+00> : vector<2x8xf32>
    %5 = tpu.matmul %3, %4, %cst_5 {dimension_numbers = #tpu.dot_dimension_numbers<[1], [0], [0], [1], [0, 0, 1, 1], [], []>} : vector<2x16xf32>, vector<16x8xf32>, vector<2x8xf32> -> vector<2x8xf32>
    %c0_6 = arith.constant 0 : index
    %c0_7 = arith.constant 0 : index
    %6 = vector.load %arg3[%c0_6, %c0_7] : memref<1x8xf32, #tpu.memory_space<vmem>>, vector<1x8xf32>
    %7 = vector.broadcast %6 : vector<1x8xf32> to vector<2x8xf32>
    %8 = arith.addf %5, %7 : vector<2x8xf32>
    %cst_8 = arith.constant 0.000000e+00 : f32
    %9 = vector.broadcast %cst_8 : f32 to vector<2x8xf32>
    %10 = arith.maximumf %8, %9 : vector<2x8xf32>
    %c0_9 = arith.constant 0 : index
    %c0_10 = arith.constant 0 : index
    %11 = vector.load %arg4[%c0_9, %c0_10] : memref<8x16xf32, #tpu.memory_space<vmem>>, vector<8x16xf32>
    %cst_11 = arith.constant dense<0.000000e+00> : vector<2x16xf32>
    %12 = tpu.matmul %10, %11, %cst_11 {dimension_numbers = #tpu.dot_dimension_numbers<[1], [0], [0], [1], [0, 0, 1, 1], [], []>} : vector<2x8xf32>, vector<8x16xf32>, vector<2x16xf32> -> vector<2x16xf32>
    %cst_12 = arith.constant 3.000000e+00 : f32
    %13 = vector.broadcast %cst_12 : f32 to vector<2x16xf32>
    %14 = arith.addf %12, %13 : vector<2x16xf32>
    %cst_13 = arith.constant 0.166666672 : f32
    %15 = vector.broadcast %cst_13 : f32 to vector<2x16xf32>
    %16 = arith.mulf %14, %15 : vector<2x16xf32>
    %cst_14 = arith.constant 0.000000e+00 : f32
    %cst_15 = arith.constant 1.000000e+00 : f32
    %17 = vector.broadcast %cst_14 : f32 to vector<2x16xf32>
    %18 = arith.maximumf %17, %16 : vector<2x16xf32>
    %19 = vector.broadcast %cst_15 : f32 to vector<2x16xf32>
    %20 = arith.minimumf %19, %18 : vector<2x16xf32>
    %21 = vector.shape_cast %20 : vector<2x16xf32> to vector<2x16x1xf32>
    %22 = vector.broadcast %21 : vector<2x16x1xf32> to vector<2x16x256xf32>
    %23 = arith.mulf %0, %22 : vector<2x16x256xf32>
    %c0_16 = arith.constant 0 : index
    %c0_17 = arith.constant 0 : index
    %c0_18 = arith.constant 0 : index
    %24 = vector.load %arg5[%c0_16, %c0_17, %c0_18] : memref<2x16x256xf32, #tpu.memory_space<vmem>>, vector<2x16x256xf32>
    tpu.vector_store %arg5[%c0_16, %c0_17, %c0_18], %23 {strides = array<i32>} : memref<2x16x256xf32, #tpu.memory_space<vmem>>, vector<2x16x256xf32>,
    return
  }
  func.func @transform_0(%arg0: i32) -> (i32, i32, i32) {
    %c0_i32 = arith.constant 0 : i32
    %c0_i32_0 = arith.constant 0 : i32
    %c0_i32_1 = arith.constant 0 : i32
    return %arg0, %c0_i32, %c0_i32_0 : i32, i32, i32
  }
  func.func @transform_1(%arg0: i32) -> (i32, i32) {
    %c0_i32 = arith.constant 0 : i32
    %c0_i32_0 = arith.constant 0 : i32
    %c0_i32_1 = arith.constant 0 : i32
    return %c0_i32, %c0_i32_0 : i32, i32
  }
  func.func @transform_2(%arg0: i32) -> (i32, i32) {
    %c0_i32 = arith.constant 0 : i32
    %c0_i32_0 = arith.constant 0 : i32
    %c0_i32_1 = arith.constant 0 : i32
    return %c0_i32, %c0_i32_0 : i32, i32
  }
  func.func @transform_3(%arg0: i32) -> (i32, i32) {
    %c0_i32 = arith.constant 0 : i32
    %c0_i32_0 = arith.constant 0 : i32
    %c0_i32_1 = arith.constant 0 : i32
    return %c0_i32, %c0_i32_0 : i32, i32
  }
  func.func @transform_4(%arg0: i32) -> (i32, i32, i32) {
    %c0_i32 = arith.constant 0 : i32
    %c0_i32_0 = arith.constant 0 : i32
    %c0_i32_1 = arith.constant 0 : i32
    return %arg0, %c0_i32, %c0_i32_0 : i32, i32, i32
  }
}

</mosaic_0001>

<bundles_post_ra>
// kernel: tpu_custom_call.1
= control target key start
LH: loop header
LB: loop body
LE: loop exit
PB: predicated region body
PF: predicated region fallthrough
CT: control target
= control target key end

     0   :  { %9 = vsyncpa [#allocation3], 0  ;;  %s484_s0 = inlined_call_operand.hbm [shape: f32[2,16,256], index: 0, kind: input, shape index: {}]   ;;  %s485_s1 = inlined_call_operand.vmem [shape: f32[16,8], index: 1, kind: input, shape index: {}]   ;;  %s486_s2 = inlined_call_operand.vmem [shape: f32[1,8], index: 2, kind: input, shape index: {}]   ;;  %s487_s3 = inlined_call_operand.vmem [shape: f32[8,16], index: 3, kind: input, shape index: {}]   ;;  %s488_s4 = inlined_call_operand.hbm [shape: f32[2,16,256], index: 4, kind: output, shape index: {}]  }
   0x1   :  { %10 = vsyncpa [#allocation4], 0  ;;  %s378_s15 = smov [#allocation2]   ;;  %s330_s19 = scalar_lea.hbm %s484_s0, 1024 }
   0x2   :  { %s16_s16 = sshll.u32 %s378_s15, 4  ;;  %p331_p0 = scmp.ne.s32.totalorder %s484_s0, %s330_s19  ;;  %s17_s16 = int_to_ptr.vmem [resolvable:$true] %s16_s16 }
   0x3   :  { %p334_p1 = scmp.lt.u32.totalorder %s330_s19, %s484_s0 }
   0x5   :  { %p336_p2 = pnand %p334_p1, %p331_p0 }
   0x7   :  { %339 = shalt.err (!%p336_p2)
}
   0x8   :  { %s340_s24 = scalar_lea.vmem %s17_s16, 1024  ;;  %p345_p4 = scmp.lt.s32.totalorder %s17_s16, %s17_s16 }
   0x9   :  { %p341_p3 = scmp.ne.s32.totalorder %s17_s16, %s340_s24  ;;  %p346_p5 = scmp.lt.s32.totalorder %s340_s24, %s340_s24 }
   0xb   :  { %p347_p6 = por %p346_p5, %p345_p4 }
   0xd   :  { %p348_p7 = pnand %p347_p6, %p341_p3 }
   0xf   :  { %351 = shalt.err (!%p348_p7)
}
  0x10   :  { %s379_s25 = smov 256   ;;  %s380_s26 = smov 16  }
  0x11   :  { %22 = dma.hbm_to_vmem [thread:$0]  %s484_s0, 1024, %s17_s16, [#allocation3], %s379_s25, %s379_s25, %s380_s26  }
  0x12   :  { %374 = dma.done.wait [#allocation3], 1024  }
  0x13   :  { %375 = vsyncadd [#allocation3], 4294966272  ;;  %v425_v0 = vld [vmem:[#allocation2 + $0x20] sm:$0xff]  ;;  %v427_v1 = vld [vmem:[#allocation2 + $0x28] sm:$0xff]  ;;  %v381_v15 = vmov 0.0|0.0   ;;  %vm382_vm0 = vmmov 0   ;;  %v69_v17 = vlaneseq }
  0x14   :  { %v429_v2 = vld [vmem:[#allocation2] sm:$0xff]  ;;  %v46_v3 = vadd.f32 %v427_v1, %v425_v0  ;;  %v433_v4 = vld [vmem:[#allocation2 + $0x8] sm:$0xff]  ;;  %v435_v5 = vld [vmem:[#allocation2 + $0x30] sm:$0xff]  ;;  %320 = vmatprep.subr.bf16.mxu0 %v381_v15  ;;  %v383_v16 = vmov 0.0   ;;  %vm80_vm1 = vcmask 130112   ;;  %vm91_vm2 = vcmask 1041409  }
  0x15   :  { %v437_v6 = vld [vmem:[#allocation2 + $0x38] sm:$0xff]  ;;  %v40_v7 = vadd.f32 %v433_v4, %v429_v2  ;;  %v441_v8 = vld [vmem:[#allocation2 + $0x10] sm:$0xff]  ;;  %v56_v12 = vld [vmem:[%s485_s1] sm:$0xff]  ;;  %312 = vmatprep.mubr.msk.f32.mxu0 %vm382_vm0, %v383_v16  ;;  %315 = vmatprep.subr.mxu1 %v383_v16  ;;  %v70_v18 = vand.u32 127, %v69_v17  ;;  %v72_v19 = vshrl.u32 %v69_v17, 7  ;;  %vm93_vm3 = vcmask 130048  }
  0x16   :  { %v443_v9 = vld [vmem:[#allocation2 + $0x18] sm:$0xff]  ;;  %47 = vadd.xlane.f32.xlu1 %v46_v3  ;;  %v49_v10 = vadd.f32 %v437_v6, %v435_v5  ;;  %v57_v13 = vld [vmem:[%s485_s1 + $0x8] sm:$0xff]  ;;  %317 = vmatprep.mubr.msk.f32.mxu1 %vm382_vm0, %v383_v16  ;;  %v167_v38 = vld [vmem:[%s487_s3] sm:$0xff]  ;;  %vm168_vm4 = vcmask 64512  }
  0x17   :  { %41 = vadd.xlane.f32.xlu0 %v40_v7  ;;  %v43_v11 = vadd.f32 %v443_v9, %v441_v8  ;;  %v321_v14 = vpack.c.bf16 %v57_v13, %v56_v12  ;;  %v75_v20 = vadd.s32 4294967288, %v70_v18  ;;  %v73_v23 = vsub.s32 %v70_v18, %v72_v19  ;;  %316 = vmatpush3.msra.mxu1 %v167_v38  ;;  %v300_v39 = vld [vmem:[%s486_s2] ss:$0 sm:$0xff]  ;;  %s384_s2 = smov [#allocation5]  }
  0x18   :  { %v247_v49 = vsub.s32 0, %v72_v19  ;;  %v258_v52 = vsub.s32 1, %v72_v19  ;;  %s288_s3 = sshll.u32 %s384_s2, 4  ;;  %s289_s3 = int_to_ptr.vmem [resolvable:$true] %s288_s3 }
  0x19   :  { %322 = vmatpush3.bf16.msra.mxu0 %v321_v14  ;;  %v78_v25 = vsub.s32 %v75_v20, %v72_v19  ;;  %s352_s9 = scalar_lea.vmem %s289_s3, 1024  ;;  %p357_p9 = scmp.lt.s32.totalorder %s289_s3, %s289_s3 }
  0x1a   :  { %50 = vadd.xlane.f32.xlu1 %v49_v10  ;;  %p353_p8 = scmp.ne.s32.totalorder %s289_s3, %s352_s9  ;;  %p358_p10 = scmp.lt.s32.totalorder %s352_s9, %s352_s9 }
  0x1b   :  { %44 = vadd.xlane.f32.xlu0 %v43_v11 }
  0x1c   :  { %p359_p11 = por %p358_p10, %p357_p9 }
  0x1e   :  { %p360_p12 = pnand %p359_p11, %p353_p8 }
  0xa3   :  { %v48_v21 = vpop.xlane.xlu1 %47 }
  0xa4   :  { %v42_v22 = vpop.xlane.xlu0 %41  ;;  %v54_v24 = vmul.f32 0.00390625, %v48_v21 }
  0xa5   :  { %v52_v26 = vmul.f32 0.00390625, %v42_v22 }
  0xa6   :  { %v85_v31 = vrot.slane %v54_v24, %v73_v23 }
  0xa7   :  { %v51_v27 = vpop.xlane.xlu1 %50  ;;  %v74_v33 = vrot.slane %v52_v26, %v73_v23 }
  0xa8   :  { %v55_v28 = vmul.f32 0.00390625, %v51_v27  ;;  %v45_v29 = vpop.xlane.xlu0 %44 }
  0xa9   :  { %v53_v30 = vmul.f32 0.00390625, %v45_v29 }
  0xaa   :  { %v89_v32 = vrot.slane %v55_v28, %v78_v25 }
  0xab   :  { %v79_v34 = vrot.slane %v53_v30, %v78_v25 }
  0xac   :  { %v90_v35 = vsel %vm80_vm1, %v89_v32, %v85_v31 }
  0xad   :  { %v81_v36 = vsel %vm80_vm1, %v79_v34, %v74_v33 }
  0xae   :  { %v92_v37 = vsel %vm91_vm2, %v90_v35, %v81_v36 }
  0xaf   :  { %313 = vmatmul.mubr.msk.f32.vlgmr.msra.gmra.mrb[0].mxu0 %vm93_vm3, %v92_v37 }
 0x182   :  { %v162_v40 = vpop.f32.mrb[0].mxu0 }
 0x183   :  { %v163_v41 = vadd.f32 %v300_v39, %v162_v40  ;;  %v314_v42 = vpop.f32.mrb[1].mxu0 }
 0x185   :  { %v166_v43 = vmax.f32 %v163_v41, 0.0 }
 0x187   :  { %318 = vmatmul.mubr.msk.f32.vlgmr.msra.gmra.mrb[0].mxu1 %vm168_vm4, %v166_v43 }
 0x25a   :  { %v238_v44 = vpop.f32.mrb[0].mxu1 }
 0x25b   :  { %v239_v45 = vadd.f32 3.0, %v238_v44  ;;  %v319_v46 = vpop.f32.mrb[1].mxu1 }
 0x25d   :  { %v242_v47 = vmul.f32 0.16666667, %v239_v45 }
 0x25f   :  { %v243_v48 = vmax.f32 %v242_v47, 0.0 }
 0x261   :  { %v244_v50 = vmin.f32 %v243_v48, 1.0 }
 0x263   :  { %v248_v51 = vrot.slane %v244_v50, %v247_v49  ;;  %v259_v53 = vrot.slane %v244_v50, %v258_v52 }
 0x265   :  { %254 = vbcast.lane.b32.xlu1 %v248_v51, 264  ;;  %250 = vbcast.lane.b32.xlu0 %v248_v51, 256 }
 0x269   :  { %261 = vbcast.lane.b32.xlu1 %v259_v53, 256 }
 0x26d   :  { %265 = vbcast.lane.b32.xlu1 %v259_v53, 264 }
 0x2d7   :  { %v255_v54 = vpop.permute.xlu1 %254  ;;  %v251_v55 = vpop.permute.xlu0 %250 }
 0x2d8   :  { %v269_v56 = vmul.f32 %v255_v54, %v441_v8  ;;  %v270_v57 = vmul.f32 %v255_v54, %v443_v9  ;;  %v267_v58 = vmul.f32 %v251_v55, %v429_v2  ;;  %v268_v59 = vmul.f32 %v251_v55, %v433_v4 }
 0x2da   :  { %277 = vst [vmem:[#allocation5 + $0x10] sm:$0xff] %v269_v56  ;;  %278 = vst [vmem:[#allocation5 + $0x18] sm:$0xff] %v270_v57 }
 0x2db   :  { %275 = vst [vmem:[#allocation5] sm:$0xff] %v267_v58  ;;  %276 = vst [vmem:[#allocation5 + $0x8] sm:$0xff] %v268_v59  ;;  %v262_v60 = vpop.permute.xlu1 %261 }
 0x2dc   :  { %v271_v61 = vmul.f32 %v262_v60, %v425_v0  ;;  %v272_v62 = vmul.f32 %v262_v60, %v427_v1 }
 0x2de   :  { %279 = vst [vmem:[#allocation5 + $0x20] sm:$0xff] %v271_v61  ;;  %280 = vst [vmem:[#allocation5 + $0x28] sm:$0xff] %v272_v62 }
 0x2df   :  { %v266_v63 = vpop.permute.xlu1 %265 }
 0x2e0   :  { %v273_v3 = vmul.f32 %v266_v63, %v435_v5  ;;  %v274_v2 = vmul.f32 %v266_v63, %v437_v6 }
 0x2e2   :  { %281 = vst [vmem:[#allocation5 + $0x30] sm:$0xff] %v273_v3  ;;  %282 = vst [vmem:[#allocation5 + $0x38] sm:$0xff] %v274_v2 }
 0x2e3   :  { %363 = shalt.err (!%p360_p12)
}
 0x2e4   :  { %s364_s12 = scalar_lea.hbm %s488_s4, 1024 }
 0x2e5   :  { %p365_p13 = scmp.ne.s32.totalorder %s488_s4, %s364_s12  ;;  %p368_p0 = scmp.lt.u32.totalorder %s364_s12, %s488_s4 }
 0x2e7   :  { %p370_p1 = pnand %p368_p0, %p365_p13 }
 0x2e9   :  { %373 = shalt.err (!%p370_p1)
}
 0x2ea   :  { %294 = dma.vmem_to_hbm [thread:$0]  %s289_s3, 1024, %s488_s4, [#allocation4], %s379_s25, %s379_s25, %s380_s26  }
 0x2eb   :  { %376 = dma.done.wait [#allocation4], 1024  }
 0x2ec   :  { %377 = vsyncadd [#allocation4], 4294966272 }
 0x2ed   :  { %298 = vsyncpa [#allocation3], 1 }
 0x2ee   :  { %299 = vsyncpa [#allocation4], 1 }

</bundles_post_ra>
